<compile_context>
chip_gen: v7x
topology: tpu7x:2x2x1
jax: 0.10.0
libtpu: 0.0.40
codegen_flags: <defaults>
</compile_context>

<pallas_src>
import functools

import jax
import jax.numpy as jnp
from jax.experimental import pallas as pl
from jax.experimental.pallas import tpu as pltpu


def _round_up(x, m):
    return ((x + m - 1) // m) * m


def _bdq_kernel(num_branches, act_per_branch, qw,
                obs_ref, wrep_ref, brep_ref,
                w1_ref, b1_ref, w2_ref, b2_ref,
                state_ref, qpack_ref):
    # representation MLP: state = relu(obs @ Wr + br)
    obs = obs_ref[...]
    state = jnp.dot(obs, wrep_ref[...], preferred_element_type=jnp.float32) + brep_ref[...]
    state = jnp.maximum(state, 0.0)
    state_ref[...] = state

    # fused first hidden layer of value net + all branch advantage nets: (bb, H1), H1 lane-full
    h1 = jnp.dot(state, w1_ref[...], preferred_element_type=jnp.float32) + b1_ref[...]
    h1 = jnp.maximum(h1, 0.0)

    # fused second layer + dueling combine: single (bb, QPAD=128) matmul in VMEM.
    # Columns [br*act : (br+1)*act] already equal Q_br = V + A_br - mean(A_br);
    # padding columns (never stored to HBM) are exactly zero.
    q = jnp.dot(h1, w2_ref[...], preferred_element_type=jnp.float32) + b2_ref[...]

    # per-branch argmax on the full 128-lane vreg using lane masks (VPU/XLU have slack).
    lane = jax.lax.broadcasted_iota(jnp.int32, q.shape, 1)
    lanef = lane.astype(jnp.float32)
    neg_inf = jnp.float32(-jnp.inf)
    amax_cols = []
    for br in range(num_branches):  # static unroll, num_branches is tiny
        lo = br * act_per_branch
        hi = lo + act_per_branch
        in_branch = (lane >= lo) & (lane < hi)
        q_m = jnp.where(in_branch, q, neg_inf)
        mx = jnp.max(q_m, axis=-1, keepdims=True)
        # first-max tie-break (matches argmax): smallest local index achieving the max,
        # kept as an exact small float so it packs directly into the f32 output slab.
        local = jnp.where(in_branch & (q_m >= mx), lanef - float(lo),
                          jnp.float32(act_per_branch))
        amax_cols.append(jnp.min(local, axis=-1, keepdims=True))

    # single narrow packed store: [Q (qw cols) | argmax-as-f32 (nb cols)]
    qpack_ref[...] = jnp.concatenate([q[:, :qw]] + amax_cols, axis=1)


def fuse_bdq_params(params, num_branches):
    """Wrapper-side weight fusion (done once, outside the kernel)."""
    W_v1, b_v1 = params["W_v1"], params["b_v1"]          # (S, h_v), (1, h_v)
    W_a1, b_a1 = params["W_a1"], params["b_a1"]          # (nb, S, h_a), (nb, 1, h_a)
    W_v2, b_v2 = params["W_v2"], params["b_v2"]          # (h_v, 1), (1, 1)
    W_a2, b_a2 = params["W_a2"], params["b_a2"]          # (nb, h_a, act), (nb, 1, act)

    h_v = W_v1.shape[1]
    h_a = W_a1.shape[-1]
    act = W_a2.shape[-1]
    H1 = h_v + num_branches * h_a
    QW = num_branches * act
    QPAD = _round_up(QW, 128)                            # lane-dense in-VMEM matmul width

    # fused first layer: [value | branch_0 | ... | branch_{nb-1}]
    W1 = jnp.concatenate([W_v1] + [W_a1[br] for br in range(num_branches)], axis=1)
    b1 = jnp.concatenate([b_v1] + [b_a1[br] for br in range(num_branches)], axis=1)

    # fused second layer + dueling combine, zero-padded to QPAD output columns
    W2 = jnp.zeros((H1, QPAD), jnp.float32)
    b2 = jnp.zeros((1, QPAD), jnp.float32)
    # value path: W_v2 column broadcast into every real action column
    W2 = W2.at[:h_v, :QW].set(jnp.tile(W_v2, (1, QW)))
    for br in range(num_branches):
        Wa = W_a2[br]
        Wa_centered = Wa - jnp.mean(Wa, axis=1, keepdims=True)
        r0 = h_v + br * h_a
        c0 = br * act
        W2 = W2.at[r0:r0 + h_a, c0:c0 + act].set(Wa_centered)
        b_c = b_v2[0, 0] + b_a2[br, 0, :] - jnp.mean(b_a2[br, 0, :])
        b2 = b2.at[0, c0:c0 + act].set(b_c)

    return {
        "W_rep": params["W_rep"], "b_rep": params["b_rep"],
        "W1": W1, "b1": b1, "W2": W2, "b2": b2,
        "h_v": h_v, "h_a": h_a, "act": act, "H1": H1, "QW": QW, "QPAD": QPAD,
    }


def _pick_batch_tiling(B, max_block_b):
    """Pick (block_b, B_pad). block_b multiple of 8; >= 2 balanced grid blocks when the
    batch is big enough to split, so v7x's second TensorCore is not idle."""
    b8 = _round_up(B, 8)
    block_b = min(max_block_b, b8)
    if b8 >= 16:  # splittable: cap at ~half so n_blocks >= 2 (megacore sharding on v7x)
        block_b = min(block_b, _round_up((b8 + 1) // 2, 8))
    block_b = max(block_b, 8)
    B_pad = _round_up(b8, block_b)
    return block_b, B_pad


def bdq_policy_forward(obs, fused, num_branches, *, max_block_b=2048):
    """Runs the BDQPolicy forward pass. Returns (outputs, argmax_actions, evalQ)."""
    B, obs_dim = obs.shape
    state_dim = fused["W_rep"].shape[1]
    act = fused["act"]
    H1 = fused["H1"]
    QW = fused["QW"]
    QPAD = fused["QPAD"]
    QOUT = QW + num_branches                             # narrow packed output width

    block_b, B_pad = _pick_batch_tiling(B, max_block_b)
    if B_pad != B:
        obs = jnp.pad(obs, ((0, B_pad - B), (0, 0)))
    n_blocks = B_pad // block_b

    batch_spec = lambda last: pl.BlockSpec((block_b, last), lambda i: (i, 0))
    const_spec = lambda shape: pl.BlockSpec(shape, lambda i: (0, 0))  # VMEM-resident weights

    args = (obs,
            fused["W_rep"], fused["b_rep"],
            fused["W1"], fused["b1"], fused["W2"], fused["b2"])

    state, qpack = pl.pallas_call(
        functools.partial(_bdq_kernel, num_branches, act, QW),
        grid=(n_blocks,),
        in_specs=[
            batch_spec(obs_dim),
            const_spec((obs_dim, state_dim)),
            const_spec((1, state_dim)),
            const_spec((state_dim, H1)),
            const_spec((1, H1)),
            const_spec((H1, QPAD)),
            const_spec((1, QPAD)),
        ],
        out_specs=(
            batch_spec(state_dim),
            batch_spec(QOUT),
        ),
        out_shape=(
            jax.ShapeDtypeStruct((B_pad, state_dim), jnp.float32),
            jax.ShapeDtypeStruct((B_pad, QOUT), jnp.float32),
        ),
        compiler_params=pltpu.CompilerParams(
            dimension_semantics=("parallel",)),  # shards batch grid across v7x's 2 TCs
    )(*args)

    state = state[:B]
    q = qpack[:B, :QW]
    amax_f = qpack[:B, QW:QW + num_branches]
    outputs = {"state": state}
    evalQ = [q[:, br * act:(br + 1) * act] for br in range(num_branches)]
    argmax_actions = [amax_f[:, br].astype(jnp.int32) for br in range(num_branches)]
    return outputs, argmax_actions, evalQ


def _reference_forward(obs, params, num_branches):
    """Pure-JAX reference (unfused) for correctness checking."""
    state = jnp.maximum(obs @ params["W_rep"] + params["b_rep"], 0.0)
    hv = jnp.maximum(state @ params["W_v1"] + params["b_v1"], 0.0)
    v = hv @ params["W_v2"] + params["b_v2"]
    qs = []
    for br in range(num_branches):
        ha = jnp.maximum(state @ params["W_a1"][br] + params["b_a1"][br], 0.0)
        adv = ha @ params["W_a2"][br] + params["b_a2"][br]
        qs.append(v + adv - jnp.mean(adv, axis=1, keepdims=True))
    return state, qs


def init_params(key, obs_dim, state_dim, h_v, h_a, num_branches, act_per_branch):
    ks = jax.random.split(key, 8)

    def lin(k, fan_in, shape):
        return jax.random.normal(k, shape, jnp.float32) / jnp.sqrt(float(fan_in))

    return {
        # representation MLP
        "W_rep": lin(ks[0], obs_dim, (obs_dim, state_dim)),
        "b_rep": jnp.zeros((1, state_dim), jnp.float32),
        # state value net
        "W_v1": lin(ks[1], state_dim, (state_dim, h_v)),
        "b_v1": jnp.full((1, h_v), 0.01, jnp.float32),
        "W_v2": lin(ks[2], h_v, (h_v, 1)),
        "b_v2": jnp.zeros((1, 1), jnp.float32),
        # branch advantage nets (stacked over branches)
        "W_a1": lin(ks[3], state_dim, (num_branches, state_dim, h_a)),
        "b_a1": jnp.full((num_branches, 1, h_a), 0.01, jnp.float32),
        "W_a2": lin(ks[4], h_a, (num_branches, h_a, act_per_branch)),
        "b_a2": jnp.zeros((num_branches, 1, act_per_branch), jnp.float32),
    }


def _check_case(obs, params, num_branches, act_per_branch, max_block_b=2048):
    fused = fuse_bdq_params(params, num_branches)
    outputs, argmax_actions, evalQ = bdq_policy_forward(
        obs, fused, num_branches, max_block_b=max_block_b)
    jax.block_until_ready(outputs["state"])
    for q in evalQ:
        jax.block_until_ready(q)
    for a in argmax_actions:
        jax.block_until_ready(a)

    B = obs.shape[0]
    ref_state, ref_qs = _reference_forward(obs, params, num_branches)
    assert jnp.allclose(outputs["state"], ref_state, atol=1e-5, rtol=1e-5)
    for q, rq, a in zip(evalQ, ref_qs, argmax_actions):
        assert q.shape == (B, act_per_branch)
        assert jnp.allclose(q, rq, atol=1e-5, rtol=1e-5)
        assert a.shape == (B,)
        assert jnp.array_equal(a, jnp.argmax(rq, axis=1))


if __name__ == "__main__":
    # Small, module-consistent shapes: action_space = MultiDiscrete([4, 4, 4])
    # -> num_branches=3, act_per_branch=4.
    B, OBS_DIM, STATE_DIM = 8, 32, 32
    H_V, H_A = 32, 32
    NUM_BRANCHES, ACT_PER_BRANCH = 3, 4

    key = jax.random.PRNGKey(0)
    k_obs, k_par, k_obs2 = jax.random.split(key, 3)
    params = init_params(k_par, OBS_DIM, STATE_DIM, H_V, H_A, NUM_BRANCHES, ACT_PER_BRANCH)

    # primary small-batch case (single grid block)
    obs = jax.random.normal(k_obs, (B, OBS_DIM), jnp.float32)
    _check_case(obs, params, NUM_BRANCHES, ACT_PER_BRANCH)

    # multi-block case: exercises batch-grid tiling, >=2 blocks (v7x sharding) and row padding
    obs2 = jax.random.normal(k_obs2, (40, OBS_DIM), jnp.float32)
    _check_case(obs2, params, NUM_BRANCHES, ACT_PER_BRANCH)

    print("KERNEL_OK")
</pallas_src>

<mosaic_0001>
module attributes {stable_mosaic.version = 11 : i64} {
  func.func @_bdq_kernel(%arg0: i32, %arg1: memref<8x32xf32, #tpu.memory_space<vmem>>, %arg2: memref<32x32xf32, #tpu.memory_space<vmem>>, %arg3: memref<1x32xf32, #tpu.memory_space<vmem>>, %arg4: memref<32x128xf32, #tpu.memory_space<vmem>>, %arg5: memref<1x128xf32, #tpu.memory_space<vmem>>, %arg6: memref<128x128xf32, #tpu.memory_space<vmem>>, %arg7: memref<1x128xf32, #tpu.memory_space<vmem>>, %arg8: memref<8x32xf32, #tpu.memory_space<vmem>>, %arg9: memref<8x15xf32, #tpu.memory_space<vmem>>) attributes {dimension_semantics = [#tpu.dimension_semantics<parallel>], iteration_bounds = array<i64: 1>, scalar_prefetch = 0 : i64, scratch_operands = 0 : i64, tpu.core_type = #tpu.core_type<tc>, window_params = [{transform_indices = @transform_0, window_bounds = array<i64: 8, 32>}, {pipeline_mode = #tpu.pipeline_mode<synchronous>, transform_indices = @transform_1, window_bounds = array<i64: 32, 32>}, {pipeline_mode = #tpu.pipeline_mode<synchronous>, transform_indices = @transform_2, window_bounds = array<i64: 1, 32>}, {pipeline_mode = #tpu.pipeline_mode<synchronous>, transform_indices = @transform_3, window_bounds = array<i64: 32, 128>}, {pipeline_mode = #tpu.pipeline_mode<synchronous>, transform_indices = @transform_4, window_bounds = array<i64: 1, 128>}, {pipeline_mode = #tpu.pipeline_mode<synchronous>, transform_indices = @transform_5, window_bounds = array<i64: 128, 128>}, {pipeline_mode = #tpu.pipeline_mode<synchronous>, transform_indices = @transform_6, window_bounds = array<i64: 1, 128>}, {transform_indices = @transform_7, window_bounds = array<i64: 8, 32>}, {transform_indices = @transform_8, window_bounds = array<i64: 8, 15>}]} {
    %c0 = arith.constant 0 : index
    %c0_0 = arith.constant 0 : index
    %0 = vector.load %arg1[%c0, %c0_0] : memref<8x32xf32, #tpu.memory_space<vmem>>, vector<8x32xf32>
    %c0_1 = arith.constant 0 : index
    %c0_2 = arith.constant 0 : index
    %1 = vector.load %arg2[%c0_1, %c0_2] : memref<32x32xf32, #tpu.memory_space<vmem>>, vector<32x32xf32>
    %cst = arith.constant dense<0.000000e+00> : vector<8x32xf32>
    %2 = tpu.matmul %0, %1, %cst {dimension_numbers = #tpu.dot_dimension_numbers<[1], [0], [0], [1], [0, 0, 1, 1], [], []>} : vector<8x32xf32>, vector<32x32xf32>, vector<8x32xf32> -> vector<8x32xf32>
    %c0_3 = arith.constant 0 : index
    %c0_4 = arith.constant 0 : index
    %3 = vector.load %arg3[%c0_3, %c0_4] : memref<1x32xf32, #tpu.memory_space<vmem>>, vector<1x32xf32>
    %4 = vector.broadcast %3 : vector<1x32xf32> to vector<8x32xf32>
    %5 = arith.addf %2, %4 : vector<8x32xf32>
    %cst_5 = arith.constant 0.000000e+00 : f32
    %6 = vector.broadcast %cst_5 : f32 to vector<8x32xf32>
    %7 = arith.maximumf %5, %6 : vector<8x32xf32>
    %c0_6 = arith.constant 0 : index
    %c0_7 = arith.constant 0 : index
    %8 = vector.load %arg8[%c0_6, %c0_7] : memref<8x32xf32, #tpu.memory_space<vmem>>, vector<8x32xf32>
    tpu.vector_store %arg8[%c0_6, %c0_7], %7 {strides = array<i32>} : memref<8x32xf32, #tpu.memory_space<vmem>>, vector<8x32xf32>,
    %c0_8 = arith.constant 0 : index
    %c0_9 = arith.constant 0 : index
    %9 = vector.load %arg4[%c0_8, %c0_9] : memref<32x128xf32, #tpu.memory_space<vmem>>, vector<32x128xf32>
    %cst_10 = arith.constant dense<0.000000e+00> : vector<8x128xf32>
    %10 = tpu.matmul %7, %9, %cst_10 {dimension_numbers = #tpu.dot_dimension_numbers<[1], [0], [0], [1], [0, 0, 1, 1], [], []>} : vector<8x32xf32>, vector<32x128xf32>, vector<8x128xf32> -> vector<8x128xf32>
    %c0_11 = arith.constant 0 : index
    %c0_12 = arith.constant 0 : index
    %11 = vector.load %arg5[%c0_11, %c0_12] : memref<1x128xf32, #tpu.memory_space<vmem>>, vector<1x128xf32>
    %12 = vector.broadcast %11 : vector<1x128xf32> to vector<8x128xf32>
    %13 = arith.addf %10, %12 : vector<8x128xf32>
    %cst_13 = arith.constant 0.000000e+00 : f32
    %14 = vector.broadcast %cst_13 : f32 to vector<8x128xf32>
    %15 = arith.maximumf %13, %14 : vector<8x128xf32>
    %c0_14 = arith.constant 0 : index
    %c0_15 = arith.constant 0 : index
    %16 = vector.load %arg6[%c0_14, %c0_15] : memref<128x128xf32, #tpu.memory_space<vmem>>, vector<128x128xf32>
    %cst_16 = arith.constant dense<0.000000e+00> : vector<8x128xf32>
    %17 = tpu.matmul %15, %16, %cst_16 {dimension_numbers = #tpu.dot_dimension_numbers<[1], [0], [0], [1], [0, 0, 1, 1], [], []>} : vector<8x128xf32>, vector<128x128xf32>, vector<8x128xf32> -> vector<8x128xf32>
    %c0_17 = arith.constant 0 : index
    %c0_18 = arith.constant 0 : index
    %18 = vector.load %arg7[%c0_17, %c0_18] : memref<1x128xf32, #tpu.memory_space<vmem>>, vector<1x128xf32>
    %19 = vector.broadcast %18 : vector<1x128xf32> to vector<8x128xf32>
    %20 = arith.addf %17, %19 : vector<8x128xf32>
    %21 = tpu.iota {dimensions = array<i32: 1>} : vector<8x128xi32>
    %22 = arith.sitofp %21 : vector<8x128xi32> to vector<8x128xf32>
    %c0_i32 = arith.constant 0 : i32
    %23 = vector.broadcast %c0_i32 : i32 to vector<8x128xi32>
    %24 = arith.cmpi sge, %21, %23 : vector<8x128xi32>
    %c4_i32 = arith.constant 4 : i32
    %25 = vector.broadcast %c4_i32 : i32 to vector<8x128xi32>
    %26 = arith.cmpi slt, %21, %25 : vector<8x128xi32>
    %27 = arith.andi %24, %26 : vector<8x128xi1>
    %cst_19 = arith.constant 0xFF800000 : f32
    %28 = vector.broadcast %cst_19 : f32 to vector<8x128xf32>
    %29 = arith.select %27, %20, %28 : vector<8x128xi1>, vector<8x128xf32>
    %cst_20 = arith.constant dense<0xFF800000> : vector<8xf32>
    %30 = vector.multi_reduction <maximumf>, %29, %cst_20 [1] : vector<8x128xf32> to vector<8xf32>
    %31 = vector.shape_cast %30 : vector<8xf32> to vector<8x1xf32>
    %32 = vector.broadcast %31 : vector<8x1xf32> to vector<8x128xf32>
    %33 = arith.cmpf oge, %29, %32 : vector<8x128xf32>
    %34 = arith.andi %27, %33 : vector<8x128xi1>
    %cst_21 = arith.constant 0.000000e+00 : f32
    %35 = vector.broadcast %cst_21 : f32 to vector<8x128xf32>
    %36 = arith.subf %22, %35 : vector<8x128xf32>
    %cst_22 = arith.constant 4.000000e+00 : f32
    %37 = vector.broadcast %cst_22 : f32 to vector<8x128xf32>
    %38 = arith.select %34, %36, %37 : vector<8x128xi1>, vector<8x128xf32>
    %cst_23 = arith.constant dense<0x7F800000> : vector<8xf32>
    %39 = vector.multi_reduction <minimumf>, %38, %cst_23 [1] : vector<8x128xf32> to vector<8xf32>
    %40 = vector.shape_cast %39 : vector<8xf32> to vector<8x1xf32>
    %c4_i32_24 = arith.constant 4 : i32
    %41 = vector.broadcast %c4_i32_24 : i32 to vector<8x128xi32>
    %42 = arith.cmpi sge, %21, %41 : vector<8x128xi32>
    %c8_i32 = arith.constant 8 : i32
    %43 = vector.broadcast %c8_i32 : i32 to vector<8x128xi32>
    %44 = arith.cmpi slt, %21, %43 : vector<8x128xi32>
    %45 = arith.andi %42, %44 : vector<8x128xi1>
    %cst_25 = arith.constant 0xFF800000 : f32
    %46 = vector.broadcast %cst_25 : f32 to vector<8x128xf32>
    %47 = arith.select %45, %20, %46 : vector<8x128xi1>, vector<8x128xf32>
    %cst_26 = arith.constant dense<0xFF800000> : vector<8xf32>
    %48 = vector.multi_reduction <maximumf>, %47, %cst_26 [1] : vector<8x128xf32> to vector<8xf32>
    %49 = vector.shape_cast %48 : vector<8xf32> to vector<8x1xf32>
    %50 = vector.broadcast %49 : vector<8x1xf32> to vector<8x128xf32>
    %51 = arith.cmpf oge, %47, %50 : vector<8x128xf32>
    %52 = arith.andi %45, %51 : vector<8x128xi1>
    %cst_27 = arith.constant 4.000000e+00 : f32
    %53 = vector.broadcast %cst_27 : f32 to vector<8x128xf32>
    %54 = arith.subf %22, %53 : vector<8x128xf32>
    %cst_28 = arith.constant 4.000000e+00 : f32
    %55 = vector.broadcast %cst_28 : f32 to vector<8x128xf32>
    %56 = arith.select %52, %54, %55 : vector<8x128xi1>, vector<8x128xf32>
    %cst_29 = arith.constant dense<0x7F800000> : vector<8xf32>
    %57 = vector.multi_reduction <minimumf>, %56, %cst_29 [1] : vector<8x128xf32> to vector<8xf32>
    %58 = vector.shape_cast %57 : vector<8xf32> to vector<8x1xf32>
    %c8_i32_30 = arith.constant 8 : i32
    %59 = vector.broadcast %c8_i32_30 : i32 to vector<8x128xi32>
    %60 = arith.cmpi sge, %21, %59 : vector<8x128xi32>
    %c12_i32 = arith.constant 12 : i32
    %61 = vector.broadcast %c12_i32 : i32 to vector<8x128xi32>
    %62 = arith.cmpi slt, %21, %61 : vector<8x128xi32>
    %63 = arith.andi %60, %62 : vector<8x128xi1>
    %cst_31 = arith.constant 0xFF800000 : f32
    %64 = vector.broadcast %cst_31 : f32 to vector<8x128xf32>
    %65 = arith.select %63, %20, %64 : vector<8x128xi1>, vector<8x128xf32>
    %cst_32 = arith.constant dense<0xFF800000> : vector<8xf32>
    %66 = vector.multi_reduction <maximumf>, %65, %cst_32 [1] : vector<8x128xf32> to vector<8xf32>
    %67 = vector.shape_cast %66 : vector<8xf32> to vector<8x1xf32>
    %68 = vector.broadcast %67 : vector<8x1xf32> to vector<8x128xf32>
    %69 = arith.cmpf oge, %65, %68 : vector<8x128xf32>
    %70 = arith.andi %63, %69 : vector<8x128xi1>
    %cst_33 = arith.constant 8.000000e+00 : f32
    %71 = vector.broadcast %cst_33 : f32 to vector<8x128xf32>
    %72 = arith.subf %22, %71 : vector<8x128xf32>
    %cst_34 = arith.constant 4.000000e+00 : f32
    %73 = vector.broadcast %cst_34 : f32 to vector<8x128xf32>
    %74 = arith.select %70, %72, %73 : vector<8x128xi1>, vector<8x128xf32>
    %cst_35 = arith.constant dense<0x7F800000> : vector<8xf32>
    %75 = vector.multi_reduction <minimumf>, %74, %cst_35 [1] : vector<8x128xf32> to vector<8xf32>
    %76 = vector.shape_cast %75 : vector<8xf32> to vector<8x1xf32>
    %77 = vector.extract_strided_slice %20 {offsets = [0, 0], sizes = [8, 12], strides = [1, 1]} : vector<8x128xf32> to vector<8x12xf32>
    %78 = tpu.concatenate %77, %40, %58, %76 in 1 : vector<8x12xf32>, vector<8x1xf32>, vector<8x1xf32>, vector<8x1xf32> -> vector<8x15xf32>
    %c0_36 = arith.constant 0 : index
    %c0_37 = arith.constant 0 : index
    %79 = vector.load %arg9[%c0_36, %c0_37] : memref<8x15xf32, #tpu.memory_space<vmem>>, vector<8x15xf32>
    tpu.vector_store %arg9[%c0_36, %c0_37], %78 {strides = array<i32>} : memref<8x15xf32, #tpu.memory_space<vmem>>, vector<8x15xf32>,
    return
  }
  func.func @transform_0(%arg0: i32) -> (i32, i32) {
    %c0_i32 = arith.constant 0 : i32
    %c0_i32_0 = arith.constant 0 : i32
    return %arg0, %c0_i32 : i32, i32
  }
  func.func @transform_1(%arg0: i32) -> (i32, i32) {
    %c0_i32 = arith.constant 0 : i32
    %c0_i32_0 = arith.constant 0 : i32
    %c0_i32_1 = arith.constant 0 : i32
    return %c0_i32, %c0_i32_0 : i32, i32
  }
  func.func @transform_2(%arg0: i32) -> (i32, i32) {
    %c0_i32 = arith.constant 0 : i32
    %c0_i32_0 = arith.constant 0 : i32
    %c0_i32_1 = arith.constant 0 : i32
    return %c0_i32, %c0_i32_0 : i32, i32
  }
  func.func @transform_3(%arg0: i32) -> (i32, i32) {
    %c0_i32 = arith.constant 0 : i32
    %c0_i32_0 = arith.constant 0 : i32
    %c0_i32_1 = arith.constant 0 : i32
    return %c0_i32, %c0_i32_0 : i32, i32
  }
  func.func @transform_4(%arg0: i32) -> (i32, i32) {
    %c0_i32 = arith.constant 0 : i32
    %c0_i32_0 = arith.constant 0 : i32
    %c0_i32_1 = arith.constant 0 : i32
    return %c0_i32, %c0_i32_0 : i32, i32
  }
  func.func @transform_5(%arg0: i32) -> (i32, i32) {
    %c0_i32 = arith.constant 0 : i32
    %c0_i32_0 = arith.constant 0 : i32
    %c0_i32_1 = arith.constant 0 : i32
    return %c0_i32, %c0_i32_0 : i32, i32
  }
  func.func @transform_6(%arg0: i32) -> (i32, i32) {
    %c0_i32 = arith.constant 0 : i32
    %c0_i32_0 = arith.constant 0 : i32
    %c0_i32_1 = arith.constant 0 : i32
    return %c0_i32, %c0_i32_0 : i32, i32
  }
  func.func @transform_7(%arg0: i32) -> (i32, i32) {
    %c0_i32 = arith.constant 0 : i32
    %c0_i32_0 = arith.constant 0 : i32
    return %arg0, %c0_i32 : i32, i32
  }
  func.func @transform_8(%arg0: i32) -> (i32, i32) {
    %c0_i32 = arith.constant 0 : i32
    %c0_i32_0 = arith.constant 0 : i32
    return %arg0, %c0_i32 : i32, i32
  }
}

</mosaic_0001>

<bundles_post_ra>
// kernel: tpu_custom_call.1
= control target key start
LH: loop header
LB: loop body
LE: loop exit
PB: predicated region body
PF: predicated region fallthrough
CT: control target
= control target key end

     0   :  { %14 = vsyncpa [#allocation3], 0  ;;  %s888_s0 = inlined_call_operand.hbm [shape: f32[8,32], index: 0, kind: input, shape index: {}]   ;;  %s889_s1 = inlined_call_operand.hbm [shape: f32[32,32], index: 1, kind: input, shape index: {}]   ;;  %s890_s2 = inlined_call_operand.vmem [shape: f32[1,32], index: 2, kind: input, shape index: {}]   ;;  %s891_s3 = inlined_call_operand.hbm [shape: f32[32,128], index: 3, kind: input, shape index: {}]   ;;  %s892_s4 = inlined_call_operand.vmem [shape: f32[1,128], index: 4, kind: input, shape index: {}]   ;;  %s893_s5 = inlined_call_operand.hbm [shape: f32[128,128], index: 5, kind: input, shape index: {}]   ;;  %s894_s6 = inlined_call_operand.vmem [shape: f32[1,128], index: 6, kind: input, shape index: {}]   ;;  %s895_s7 = inlined_call_operand.hbm [shape: f32[8,32], index: 7, kind: output, shape index: {0}]   ;;  %s896_s8 = inlined_call_operand.hbm [shape: f32[8,15], index: 8, kind: output, shape index: {1}]  }
   0x1   :  { %15 = vsyncpa [#allocation6], 0 }
   0x2   :  { %16 = vsyncpa [#allocation9], 0 }
   0x3   :  { %17 = vsyncpa [#allocation4], 0 }
   0x4   :  { %18 = vsyncpa [#allocation12], 0  ;;  %s706_s27 = smov [#allocation5]   ;;  %s564_s9 = scalar_lea.hbm %s889_s1, 512 }
   0x5   :  { %s34_s28 = sshll.u32 %s706_s27, 4  ;;  %p565_p0 = scmp.ne.s32.totalorder %s889_s1, %s564_s9  ;;  %s35_s28 = int_to_ptr.vmem [resolvable:$true] %s34_s28 }
   0x6   :  { %p568_p1 = scmp.lt.u32.totalorder %s564_s9, %s889_s1 }
   0x8   :  { %p570_p2 = pnand %p568_p1, %p565_p0 }
   0xa   :  { %573 = shalt.err (!%p570_p2)
}
   0xb   :  { %s574_s14 = scalar_lea.vmem %s35_s28, 512  ;;  %p579_p4 = scmp.lt.s32.totalorder %s35_s28, %s35_s28 }
   0xc   :  { %p575_p3 = scmp.ne.s32.totalorder %s35_s28, %s574_s14  ;;  %p580_p5 = scmp.lt.s32.totalorder %s574_s14, %s574_s14 }
   0xe   :  { %p581_p6 = por %p580_p5, %p579_p4 }
  0x10   :  { %p582_p7 = pnand %p581_p6, %p575_p3 }
  0x12   :  { %585 = shalt.err (!%p582_p7)
}
  0x13   :  { %s707_s15 = smov 128   ;;  %s708_s16 = smov 8  }
  0x14   :  { %40 = dma.hbm_to_vmem [thread:$0]  %s889_s1, 512, %s35_s28, [#allocation6], %s707_s15, %s707_s15, %s708_s16  }
  0x15   :  { %s709_s19 = smov [#allocation2]   ;;  %s710_s21 = smov [#allocation7]  }
  0x16   :  { %s25_s20 = sshll.u32 %s709_s19, 4  ;;  %s48_s22 = sshll.u32 %s710_s21, 4  ;;  %s26_s20 = int_to_ptr.vmem [resolvable:$true] %s25_s20  ;;  %s49_s22 = int_to_ptr.vmem [resolvable:$true] %s48_s22 }
  0x17   :  { %s586_s25 = scalar_lea.hbm %s888_s0, 128 }
  0x18   :  { %p587_p8 = scmp.ne.s32.totalorder %s888_s0, %s586_s25  ;;  %p590_p9 = scmp.lt.u32.totalorder %s586_s25, %s888_s0 }
  0x1a   :  { %p592_p10 = pnand %p590_p9, %p587_p8 }
  0x1c   :  { %595 = shalt.err (!%p592_p10)
}
  0x1d   :  { %s596_s1 = scalar_lea.vmem %s26_s20, 128  ;;  %p601_p12 = scmp.lt.s32.totalorder %s26_s20, %s26_s20 }
  0x1e   :  { %p597_p11 = scmp.ne.s32.totalorder %s26_s20, %s596_s1  ;;  %p602_p13 = scmp.lt.s32.totalorder %s596_s1, %s596_s1 }
  0x20   :  { %p603_p0 = por %p602_p13, %p601_p12 }
  0x22   :  { %p604_p1 = pnand %p603_p0, %p597_p11 }
  0x24   :  { %607 = shalt.err (!%p604_p1)
}
  0x25   :  { %28 = dma.hbm_to_vmem [thread:$0]  %s888_s0, 128, %s26_s20, [#allocation3]  }
  0x26   :  { %s608_s12 = scalar_lea.hbm %s891_s3, 512 }
  0x27   :  { %p609_p2 = scmp.ne.s32.totalorder %s891_s3, %s608_s12  ;;  %p612_p3 = scmp.lt.u32.totalorder %s608_s12, %s891_s3 }
  0x29   :  { %p614_p4 = pnand %p612_p3, %p609_p2 }
  0x2b   :  { %617 = shalt.err (!%p614_p4)
}
  0x2c   :  { %s618_s19 = scalar_lea.vmem %s49_s22, 512  ;;  %p623_p6 = scmp.lt.s32.totalorder %s49_s22, %s49_s22 }
  0x2d   :  { %p619_p5 = scmp.ne.s32.totalorder %s49_s22, %s618_s19  ;;  %p624_p7 = scmp.lt.s32.totalorder %s618_s19, %s618_s19 }
  0x2f   :  { %p625_p8 = por %p624_p7, %p623_p6 }
  0x31   :  { %p626_p9 = pnand %p625_p8, %p619_p5 }
  0x33   :  { %629 = shalt.err (!%p626_p9)
}
  0x34   :  { %54 = dma.hbm_to_vmem [thread:$0]  %s891_s3, 512, %s49_s22, [#allocation6], %s707_s15, %s707_s15, %s708_s16  }
  0x35   :  { %s711_s21 = smov [#allocation8]   ;;  %s630_s26 = scalar_lea.hbm %s893_s5, 2048 }
  0x36   :  { %s62_s23 = sshll.u32 %s711_s21, 4  ;;  %p631_p10 = scmp.ne.s32.totalorder %s893_s5, %s630_s26  ;;  %s63_s23 = int_to_ptr.vmem [resolvable:$true] %s62_s23 }
  0x37   :  { %p634_p11 = scmp.lt.u32.totalorder %s630_s26, %s893_s5 }
  0x39   :  { %p636_p12 = pnand %p634_p11, %p631_p10 }
  0x3b   :  { %639 = shalt.err (!%p636_p12)
}
  0x3c   :  { %s640_s28 = scalar_lea.vmem %s63_s23, 2048  ;;  %p645_p0 = scmp.lt.s32.totalorder %s63_s23, %s63_s23 }
  0x3d   :  { %p641_p13 = scmp.ne.s32.totalorder %s63_s23, %s640_s28  ;;  %p646_p1 = scmp.lt.s32.totalorder %s640_s28, %s640_s28 }
  0x3f   :  { %p647_p2 = por %p646_p1, %p645_p0 }
  0x41   :  { %p648_p3 = pnand %p647_p2, %p641_p13 }
  0x43   :  { %651 = shalt.err (!%p648_p3)
}
  0x44   :  { %68 = dma.hbm_to_vmem [thread:$0]  %s893_s5, 2048, %s63_s23, [#allocation9], %s707_s15, %s707_s15, %s708_s16  }
  0x45   :  { %696 = dma.done.wait [#allocation3], 128  }
  0x46   :  { %697 = vsyncadd [#allocation3], 4294967168 }
  0x47   :  { %698 = dma.done.wait [#allocation6], 1024  }
  0x48   :  { %699 = vsyncadd [#allocation6], 4294966272 }
  0x49   :  { %700 = dma.done.wait [#allocation9], 2048  }
  0x4a   :  { %701 = vsyncadd [#allocation9], 4294965248  ;;  %v712_v0 = vmov 0.0|0.0   ;;  %vm713_vm0 = vmmov 0   ;;  %v714_v1 = vmov 0.0   ;;  %v84_v2 = vld [vmem:[#allocation5] sm:$0xff]  ;;  %v349_v49 = vlaneseq }
  0x4b   :  { %517 = vmatprep.subr.bf16.mxu1 %v712_v0  ;;  %468 = vmatprep.mubr.msk.f32.mxu1 %vm713_vm0, %v714_v1  ;;  %v85_v3 = vld [vmem:[#allocation5 + $0x8] sm:$0xff]  ;;  %v86_v4 = vld [vmem:[#allocation5 + $0x10] sm:$0xff]  ;;  %v87_v6 = vld [vmem:[#allocation5 + $0x18] sm:$0xff]  ;;  %vm95_vm1 = vcmask 261120  }
  0x4c   :  { %529 = vmatprep.subr.bf16.mxu0 %v712_v0  ;;  %514 = vmatprep.mubr.msk.f32.mxu0 %vm713_vm0, %v714_v1  ;;  %v518_v5 = vpack.c.bf16 %v85_v3, %v84_v2  ;;  %v521_v7 = vpack.c.bf16 %v87_v6, %v86_v4  ;;  %v171_v8 = vld [vmem:[#allocation7] sm:$0xff]  ;;  %v172_v9 = vld [vmem:[#allocation7 + $0x8] sm:$0xff]  ;;  %v83_v10 = vld [vmem:[#allocation2] sm:$0xff]  ;;  %v350_v50 = vand.u32 127, %v349_v49 }
  0x4d   :  { %v524_v11 = vpack.c.bf16 %v172_v9, %v171_v8  ;;  %v173_v12 = vld [vmem:[#allocation7 + $0x10] sm:$0xff]  ;;  %v174_v13 = vld [vmem:[#allocation7 + $0x18] sm:$0xff]  ;;  %v256_v15 = vld [vmem:[#allocation8] sm:$0xff] }
  0x4e   :  { %519 = vmatpush3.bf16.msra.mxu1 %v518_v5  ;;  %v527_v14 = vpack.c.bf16 %v174_v13, %v173_v12  ;;  %v257_v16 = vld [vmem:[#allocation8 + $0x8] sm:$0xff]  ;;  %v258_v17 = vld [vmem:[#allocation8 + $0x10] sm:$0xff]  ;;  %v259_v19 = vld [vmem:[#allocation8 + $0x18] sm:$0xff]  ;;  %vm375_vm2 = vcmp.ge.s32.totalorder %v350_v50, 8  ;;  %vm376_vm3 = vcmp.lt.s32.totalorder %v350_v50, 12  ;;  %vm353_vm5 = vcmp.lt.s32.totalorder %v350_v50, 4 }
  0x4f   :  { %520 = vmatprep.subr.bf16.mxu1 %v712_v0  ;;  %v530_v18 = vpack.c.bf16 %v257_v16, %v256_v15  ;;  %v533_v20 = vpack.c.bf16 %v259_v19, %v258_v17  ;;  %v260_v21 = vld [vmem:[#allocation8 + $0x20] sm:$0xff]  ;;  %v261_v22 = vld [vmem:[#allocation8 + $0x28] sm:$0xff]  ;;  %v262_v24 = vld [vmem:[#allocation8 + $0x30] sm:$0xff]  ;;  %vm363_vm6 = vcmp.ge.s32.totalorder %v350_v50, 4  ;;  %vm364_vm7 = vcmp.lt.s32.totalorder %v350_v50, 8 }
  0x50   :  { %v536_v23 = vpack.c.bf16 %v261_v22, %v260_v21  ;;  %v263_v25 = vld [vmem:[#allocation8 + $0x38] sm:$0xff]  ;;  %v264_v27 = vld [vmem:[#allocation8 + $0x40] sm:$0xff]  ;;  %v265_v28 = vld [vmem:[#allocation8 + $0x48] sm:$0xff]  ;;  %v351_v60 = vcvt.s32.f32 %v350_v50 }
  0x51   :  { %531 = vmatpush3.bf16.msra.mxu0 %v530_v18  ;;  %v539_v26 = vpack.c.bf16 %v263_v25, %v262_v24  ;;  %v542_v29 = vpack.c.bf16 %v265_v28, %v264_v27  ;;  %v266_v30 = vld [vmem:[#allocation8 + $0x50] sm:$0xff]  ;;  %v267_v31 = vld [vmem:[#allocation8 + $0x58] sm:$0xff]  ;;  %v268_v33 = vld [vmem:[#allocation8 + $0x60] sm:$0xff] }
  0x52   :  { %522 = vmatpush3.bf16.msra.mxu1 %v521_v7  ;;  %532 = vmatprep.subr.bf16.mxu0 %v712_v0  ;;  %v545_v32 = vpack.c.bf16 %v267_v31, %v266_v30  ;;  %v269_v34 = vld [vmem:[#allocation8 + $0x68] sm:$0xff]  ;;  %v426_v36 = vld [vmem:[%s890_s2] ss:$0 sm:$0xff]  ;;  %v270_v41 = vld [vmem:[#allocation8 + $0x70] sm:$0xff] }
  0x53   :  { %523 = vmatprep.subr.bf16.mxu1 %v712_v0  ;;  %v548_v35 = vpack.c.bf16 %v269_v34, %v268_v33  ;;  %v271_v42 = vld [vmem:[#allocation8 + $0x78] sm:$0xff]  ;;  %vm846_vm4 = vmand %vm375_vm2, %vm376_vm3 }
  0x54   :  { %v551_v43 = vpack.c.bf16 %v271_v42, %v270_v41  ;;  %v428_v44 = vld [vmem:[%s892_s4] ss:$0 sm:$0xff]  ;;  %vm853_vm8 = vmand %vm363_vm6, %vm364_vm7  ;;  %s715_s4 = smov [#allocation10]  }
  0x55   :  { %469 = vmatmul.mubr.msk.f32.vlgmr.msra.gmra.mrb[0].mxu1 %vm95_vm1, %v83_v10  ;;  %534 = vmatpush3.bf16.msra.mxu0 %v533_v20  ;;  %v430_v51 = vld [vmem:[%s894_s6] ss:$0 sm:$0xff]  ;;  %s401_s6 = sshll.u32 %s715_s4, 4  ;;  %s402_s6 = int_to_ptr.vmem [resolvable:$true] %s401_s6 }
  0x56   :  { %525 = vmatpush3.bf16.msra.mxu1 %v524_v11  ;;  %479 = vmatprep.mubr.msk.f32.mxu1 %vm713_vm0, %v714_v1  ;;  %v431_v1 = vadd.f32 -4.0, %v351_v60  ;;  %s652_s11 = scalar_lea.vmem %s402_s6, 128  ;;  %p657_p5 = scmp.lt.s32.totalorder %s402_s6, %s402_s6 }
  0x57   :  { %526 = vmatprep.subr.bf16.mxu1 %v712_v0  ;;  %535 = vmatprep.subr.bf16.mxu0 %v712_v0  ;;  %p653_p4 = scmp.ne.s32.totalorder %s402_s6, %s652_s11  ;;  %p658_p6 = scmp.lt.s32.totalorder %s652_s11, %s652_s11 }
  0x59   :  { %537 = vmatpush3.bf16.msra.mxu0 %v536_v23  ;;  %p659_p7 = por %p658_p6, %p657_p5 }
  0x5a   :  { %528 = vmatpush3.bf16.msra.mxu1 %v527_v14  ;;  %538 = vmatprep.subr.bf16.mxu0 %v712_v0 }
  0x5b   :  { %p660_p8 = pnand %p659_p7, %p653_p4 }
  0x5d   :  { %540 = vmatpush3.bf16.msra.mxu0 %v539_v26 }
  0x5e   :  { %541 = vmatprep.subr.bf16.mxu0 %v712_v0 }
  0x61   :  { %543 = vmatpush3.bf16.msra.mxu0 %v542_v29 }
  0x62   :  { %544 = vmatprep.subr.bf16.mxu0 %v712_v0 }
  0x65   :  { %546 = vmatpush3.bf16.msra.mxu0 %v545_v32 }
  0x66   :  { %547 = vmatprep.subr.bf16.mxu0 %v712_v0 }
  0x69   :  { %549 = vmatpush3.bf16.msra.mxu0 %v548_v35 }
  0x6a   :  { %550 = vmatprep.subr.bf16.mxu0 %v712_v0  ;;  %v432_v0 = vadd.f32 -8.0, %v351_v60 }
  0x6d   :  { %552 = vmatpush3.bf16.msra.mxu0 %v551_v43 }
 0x128   :  { %v165_v37 = vpop.f32.mrb[0].mxu1 }
 0x129   :  { %v166_v38 = vadd.f32 %v426_v36, %v165_v37  ;;  %v470_v39 = vpop.f32.mrb[1].mxu1 }
 0x12b   :  { %v169_v40 = vmax.f32 %v166_v38, 0.0 }
 0x12d   :  { %170 = vst.msk [vmem:[#allocation10] sm:$0xff] %vm95_vm1, %v169_v40  ;;  %480 = vmatmul.mubr.msk.f32.vlgmr.msra.gmra.mrb[2].mxu1 %vm95_vm1, %v169_v40 }
 0x200   :  { %v251_v45 = vpop.f32.mrb[2].mxu1 }
 0x201   :  { %v252_v46 = vadd.f32 %v428_v44, %v251_v45  ;;  %v481_v47 = vpop.f32.mrb[3].mxu1 }
 0x203   :  { %v255_v48 = vmax.f32 %v252_v46, 0.0 }
 0x205   :  { %515 = vmatmul.mubr.f32.vlgmr.msra.gmra.mrb[0].mxu0 %v255_v48 }
 0x2d8   :  { %v345_v52 = vpop.f32.mrb[0].mxu0 }
 0x2d9   :  { %v346_v54 = vadd.f32 %v430_v51, %v345_v52  ;;  %v516_v55 = vpop.f32.mrb[1].mxu0 }
 0x2db   :  { %v378_v56 = vsel %vm846_vm4, %v346_v54, -inf  ;;  %v355_v57 = vsel %vm353_vm5, %v346_v54, -inf  ;;  %v366_v59 = vsel %vm853_vm8, %v346_v54, -inf }
 0x2dc   :  { %379 = vmax.xlane.f32.xlu1 %v378_v56  ;;  %356 = vmax.xlane.f32.xlu0 %v355_v57 }
 0x2e0   :  { %367 = vmax.xlane.f32.xlu0 %v366_v59 }
 0x369   :  { %v380_v61 = vpop.xlane.xlu1 %379  ;;  %v357_v62 = vpop.xlane.xlu0 %356 }
 0x36a   :  { %vm381_vm9 = vcmp.ge.f32.partialorder %v378_v56, %v380_v61  ;;  %vm358_vm10 = vcmp.ge.f32.partialorder %v355_v57, %v357_v62 }
 0x36b   :  { %vm359_vm11 = vmand %vm353_vm5, %vm358_vm10 }
 0x36c   :  { %v360_v63 = vsel %vm359_vm11, %v351_v60, 4.0  ;;  %vm382_vm12 = vmand %vm846_vm4, %vm381_vm9 }
 0x36d   :  { %361 = vmin.xlane.f32.xlu1 %v360_v63  ;;  %v368_v2 = vpop.xlane.xlu0 %367  ;;  %v384_v3 = vsel %vm382_vm12, %v432_v0, 4.0 }
 0x36e   :  { %vm369_vm13 = vcmp.ge.f32.partialorder %v366_v59, %v368_v2 }
 0x36f   :  { %vm370_vm14 = vmand %vm853_vm8, %vm369_vm13 }
 0x370   :  { %v372_v4 = vsel %vm370_vm14, %v431_v1, 4.0 }
 0x371   :  { %385 = vmin.xlane.f32.xlu1 %v384_v3  ;;  %373 = vmin.xlane.f32.xlu0 %v372_v4 }
 0x372   :  { %663 = shalt.err (!%p660_p8)
}
 0x373   :  { %s664_s14 = scalar_lea.hbm %s895_s7, 128 }
 0x374   :  { %p665_p9 = scmp.ne.s32.totalorder %s895_s7, %s664_s14  ;;  %p668_p10 = scmp.lt.u32.totalorder %s664_s14, %s895_s7 }
 0x376   :  { %p670_p11 = pnand %p668_p10, %p665_p9 }
 0x378   :  { %673 = shalt.err (!%p670_p11)
}
 0x379   :  { %404 = dma.vmem_to_hbm [thread:$0]  %s402_s6, 128, %s895_s7, [#allocation4]   ;;  %vm387_vm15 = vcmask 97280   ;;  %vm389_vm0 = vcmask 105472   ;;  %vm391_vm1 = vcmask 113664   ;;  %vm393_vm2 = vcmask 121856  }
 0x37a   :  { %s716_s23 = smov [#allocation11]  }
 0x37b   :  { %s411_s24 = sshll.u32 %s716_s23, 4  ;;  %s412_s24 = int_to_ptr.vmem [resolvable:$true] %s411_s24 }
 0x37c   :  { %s674_s25 = scalar_lea.vmem %s412_s24, 128  ;;  %p679_p13 = scmp.lt.s32.totalorder %s412_s24, %s412_s24 }
 0x37d   :  { %p675_p12 = scmp.ne.s32.totalorder %s412_s24, %s674_s25  ;;  %p680_p0 = scmp.lt.s32.totalorder %s674_s25, %s674_s25 }
 0x37f   :  { %p681_p1 = por %p680_p0, %p679_p13 }
 0x381   :  { %p682_p2 = pnand %p681_p1, %p675_p12 }
 0x3fa   :  { %v362_v5 = vpop.xlane.xlu1 %361 }
 0x3fb   :  { %v388_v6 = vsel %vm387_vm15, %v346_v54, %v362_v5 }
 0x3fe   :  { %v386_v7 = vpop.xlane.xlu1 %385  ;;  %v374_v8 = vpop.xlane.xlu0 %373 }
 0x3ff   :  { %v390_v9 = vsel %vm389_vm0, %v388_v6, %v374_v8 }
 0x400   :  { %v392_v10 = vsel %vm391_vm1, %v390_v9, %v386_v7 }
 0x401   :  { %394 = vst.msk [vmem:[#allocation11] sm:$0xff] %vm393_vm2, %v392_v10 }
 0x402   :  { %685 = shalt.err (!%p682_p2)
}
 0x403   :  { %s686_s27 = scalar_lea.hbm %s896_s8, 128 }
 0x404   :  { %p687_p3 = scmp.ne.s32.totalorder %s896_s8, %s686_s27  ;;  %p690_p4 = scmp.lt.u32.totalorder %s686_s27, %s896_s8 }
 0x406   :  { %p692_p5 = pnand %p690_p4, %p687_p3 }
 0x408   :  { %695 = shalt.err (!%p692_p5)
}
 0x409   :  { %414 = dma.vmem_to_hbm [thread:$0]  %s412_s24, 128, %s896_s8, [#allocation12]  }
 0x40a   :  { %702 = dma.done.wait [#allocation4], 128  }
 0x40b   :  { %703 = vsyncadd [#allocation4], 4294967168 }
 0x40c   :  { %704 = dma.done.wait [#allocation12], 128  }
 0x40d   :  { %705 = vsyncadd [#allocation12], 4294967168 }
 0x40e   :  { %421 = vsyncpa [#allocation3], 1 }
 0x40f   :  { %422 = vsyncpa [#allocation6], 1 }
 0x410   :  { %423 = vsyncpa [#allocation9], 1 }
 0x411   :  { %424 = vsyncpa [#allocation4], 1 }
 0x412   :  { %425 = vsyncpa [#allocation12], 1 }

</bundles_post_ra>
